<compile_context>
chip_gen: v7x
topology: tpu7x:2x2x1
jax: 0.10.0
libtpu: 0.0.40
codegen_flags: <defaults>
</compile_context>

<pallas_src>
import functools
import math

import jax
import jax.numpy as jnp
from jax import lax
from jax.experimental import pallas as pl
from jax.experimental.pallas import tpu as pltpu

LANE = 128
SUBLANE = 8


def _pad_up(v, m):
    return ((v + m - 1) // m) * m


def hl_gauss_fwd_kernel(x_ref, w_ref, c_ref, out_ref, *, compute_dtype, approx_reciprocal):
    """x_ref: (blk, D), w_ref: (NB, D), c_ref: (NB, 1) f32, out_ref: (1, blk) f32.

    out[b] = sum_k softmax(x[b] @ W.T)[k] * centers[k], computed with logits transposed
    (bins on sublanes, batch on lanes) so reductions and the output stay lane-dense.
    """
    x = x_ref[...]
    if compute_dtype is not None:
        x = x.astype(compute_dtype)          # in-kernel cast: no extra HBM pass over embed
    # Bias-free linear on the MXU, NT form (contract the lane/D axis of both operands),
    # f32 accumulation; result is logits^T of shape (NB, blk).
    logits_t = lax.dot_general(
        w_ref[...], x,
        dimension_numbers=(((1,), (1,)), ((), ())),
        preferred_element_type=jnp.float32,
    )
    # Numerically stable softmax-expectation over the bin (sublane) axis without
    # materializing probs: reduce e and e*centers separately, one divide per batch row.
    m = jnp.max(logits_t, axis=0, keepdims=True)            # (1, blk)
    e = jnp.exp(logits_t - m)                                # (NB, blk) f32
    den = jnp.sum(e, axis=0, keepdims=True)                  # (1, blk)
    num = jnp.sum(e * c_ref[...], axis=0, keepdims=True)     # (1, blk)
    out_ref[...] = num * pl.reciprocal(den, approx=approx_reciprocal)


def _vmem_capacity_bytes():
    try:
        cap = int(pltpu.get_tpu_info().vmem_capacity_bytes)
        if cap > 0:
            return cap
    except Exception:
        pass
    return 64 * 2 ** 20  # v7x-safe fallback (v5e/v6e have 128 MiB)


def _per_row_vmem_bytes(D, NB, x_itemsize, cast_itemsize):
    """Per-batch-row VMEM bytes, including lane/sublane padding of small minor dims."""
    d_pad = _pad_up(D, LANE)
    nb_pad = _pad_up(NB, SUBLANE)
    return (2 * d_pad * x_itemsize          # double-buffered embed tile (lane-padded)
            + 2 * SUBLANE * 4               # double-buffered (1, blk) f32 output row (sublane-padded)
            + 3 * nb_pad * 4                # logits^T, e, e*centers intermediates (f32)
            + 3 * SUBLANE * 4               # m / den / num row vectors
            + cast_itemsize * d_pad         # in-kernel low-precision copy of x (if any)
            + d_pad * x_itemsize)           # slack for a possible MXU-feed relayout of x


def _choose_block_b(B, max_rows):
    """Pick the batch tile: one maximal tile if it fits, else the largest 128-aligned divisor
    (preferring an even step count for 2-TC parts); returns (block_b, batch_padding)."""
    max_rows = max(LANE, (max_rows // LANE) * LANE)
    if B <= max_rows:
        return B, 0
    best = {0: None, 1: None}
    for blk in range(max_rows, LANE - 1, -LANE):
        if B % blk == 0:
            parity = (B // blk) % 2
            if best[parity] is None:
                best[parity] = blk
            if best[0] is not None and best[1] is not None:
                break
    if best[0] is not None and (best[1] is None or best[0] * 4 >= best[1]):
        return best[0], 0                     # even number of steps
    if best[1] is not None:
        return best[1], 0                     # odd but large tiles; fine when many steps
    blk = max_rows                            # no aligned divisor: pad the batch
    return blk, _pad_up(B, blk) - B


def hl_gauss_layer_forward(embed, weight, centers, *, block_b=None,
                           compute_dtype=None, approx_reciprocal=None,
                           vmem_budget_frac=0.55):
    """Fused HLGaussLayer forward (norm_embed=False, use_classification=True, target=None).

    embed:   (B, D)   activations
    weight:  (NB, D)  nn.Linear(dim, num_bins, bias=False).weight (native torch layout)
    centers: (NB,)    HLGaussLoss bin centers
    returns  (B,) f32 == (softmax(embed @ weight.T, -1) * centers).sum(-1)

    compute_dtype=None (default) is the exact-f32 path (strict parity with the PyTorch layer);
    compute_dtype=jnp.bfloat16 casts embed in-kernel / weight in the wrapper for bf16 MXU use.
    """
    B, D = embed.shape
    NB, D2 = weight.shape
    assert D == D2 and centers.shape == (NB,)

    if approx_reciprocal is None:
        approx_reciprocal = compute_dtype is not None

    x_itemsize = jnp.dtype(embed.dtype).itemsize
    cast_itemsize = 0 if compute_dtype is None else jnp.dtype(compute_dtype).itemsize
    if compute_dtype is not None:
        weight = weight.astype(compute_dtype)     # tiny (NB*D); embed is cast inside the kernel

    d_pad = _pad_up(D, LANE)
    nb_pad = _pad_up(NB, SUBLANE)
    cap = _vmem_capacity_bytes()
    fixed = 2 * (nb_pad * d_pad * jnp.dtype(weight.dtype).itemsize
                 + nb_pad * LANE * 4) + (2 << 20)          # resident weight + centers + headroom
    per_row = _per_row_vmem_bytes(D, NB, x_itemsize, cast_itemsize)
    budget = int(cap * vmem_budget_frac)
    max_rows = max(LANE, min(65536, (budget - fixed) // per_row))

    if block_b is None:
        block_b, pad = _choose_block_b(B, max_rows)
    else:
        assert block_b == B or block_b % LANE == 0, "lane-dense output needs block_b % 128 == 0"
        pad = 0 if block_b == B else (-B) % block_b

    if pad:
        embed = jnp.pad(embed, ((0, pad), (0, 0)))          # correctness fallback; sliced below
    B_pad = B + pad
    grid = (B_pad // block_b,)

    est = fixed + block_b * per_row
    vmem_limit = int(min(int(cap * 0.9), max(est + (4 << 20), 16 << 20)))

    kernel = functools.partial(hl_gauss_fwd_kernel,
                               compute_dtype=compute_dtype,
                               approx_reciprocal=approx_reciprocal)
    c_col = centers.astype(jnp.float32).reshape(NB, 1)      # bins on the sublane axis

    out = pl.pallas_call(
        kernel,
        out_shape=jax.ShapeDtypeStruct((1, B_pad), jnp.float32),
        grid=grid,
        in_specs=[
            pl.BlockSpec((block_b, D), lambda i: (i, 0)),
            pl.BlockSpec((NB, D), lambda i: (0, 0)),        # resident: constant block index
            pl.BlockSpec((NB, 1), lambda i: (0, 0)),        # resident: constant block index
        ],
        out_specs=pl.BlockSpec((1, block_b), lambda i: (0, i)),   # lane-dense output row
        compiler_params=pltpu.CompilerParams(
            dimension_semantics=("parallel",),
            vmem_limit_bytes=vmem_limit,
        ),
    )(embed, weight, c_col)

    out = out.reshape(B_pad)
    return out[:B] if pad else out


def hl_gauss_layer_reference(embed, weight, centers, compute_dtype=None):
    if compute_dtype is not None:
        embed = embed.astype(compute_dtype)
        weight = weight.astype(compute_dtype)
    logits = jnp.dot(embed, weight.T, preferred_element_type=jnp.float32)
    probs = jax.nn.softmax(logits, axis=-1)
    return jnp.sum(probs * centers.astype(jnp.float32), axis=-1)


if __name__ == "__main__":
    # HLGaussLayer(dim=32, hl_gauss_loss=dict(min_value=0.0, max_value=5.0, num_bins=16))
    dim = 32
    num_bins = 16
    batch = 8
    min_value, max_value = 0.0, 5.0

    # support / centers exactly as in HLGaussLoss.__init__
    support = jnp.linspace(min_value, max_value, num_bins + 1, dtype=jnp.float32)
    centers = (support[:-1] + support[1:]) / 2.0

    key = jax.random.PRNGKey(0)
    k_x, k_w = jax.random.split(key)
    embed = jax.random.normal(k_x, (batch, dim), dtype=jnp.float32)
    # deterministic init for nn.Linear(dim, num_bins, bias=False)
    weight = jax.random.normal(k_w, (num_bins, dim), dtype=jnp.float32) / math.sqrt(dim)

    # 1) default exact-f32 path: strict parity with the PyTorch layer (single maximal tile).
    pred_f32 = jax.block_until_ready(hl_gauss_layer_forward(embed, weight, centers))
    ref_f32 = hl_gauss_layer_reference(embed, weight, centers)
    assert pred_f32.shape == (batch,)
    assert jnp.allclose(pred_f32, ref_f32, rtol=1e-4, atol=1e-4), (pred_f32, ref_f32)

    # 2) reduced-precision path: embed cast in-kernel to bf16, approx (EUP) reciprocal.
    pred_bf16 = jax.block_until_ready(
        hl_gauss_layer_forward(embed, weight, centers, compute_dtype=jnp.bfloat16))
    ref_bf16 = hl_gauss_layer_reference(embed, weight, centers, compute_dtype=jnp.bfloat16)
    assert jnp.allclose(pred_bf16, ref_bf16, rtol=5e-3, atol=5e-3), (pred_bf16, ref_bf16)

    # 3) multi-step grid path (forced small tiles so it runs fast at test scale).
    k_x2, _ = jax.random.split(k_x)
    embed_big = jax.random.normal(k_x2, (256, dim), dtype=jnp.float32)
    pred_ms = jax.block_until_ready(
        hl_gauss_layer_forward(embed_big, weight, centers, block_b=128))
    ref_ms = hl_gauss_layer_reference(embed_big, weight, centers)
    assert jnp.allclose(pred_ms, ref_ms, rtol=1e-4, atol=1e-4)

    # 4) non-divisible batch -> zero-pad fallback, padded rows discarded.
    embed_odd = embed_big[:200]
    pred_pad = jax.block_until_ready(
        hl_gauss_layer_forward(embed_odd, weight, centers, block_b=128))
    ref_pad = hl_gauss_layer_reference(embed_odd, weight, centers)
    assert pred_pad.shape == (200,)
    assert jnp.allclose(pred_pad, ref_pad, rtol=1e-4, atol=1e-4)

    print("KERNEL_OK")
</pallas_src>

<mosaic_0001>
module attributes {stable_mosaic.version = 11 : i64} {
  func.func @hl_gauss_fwd_kernel(%arg0: i32, %arg1: memref<8x32xf32, #tpu.memory_space<vmem>>, %arg2: memref<16x32xf32, #tpu.memory_space<vmem>>, %arg3: memref<16x1xf32, #tpu.memory_space<vmem>>, %arg4: memref<1x8xf32, #tpu.memory_space<vmem>>) attributes {dimension_semantics = [#tpu.dimension_semantics<parallel>], iteration_bounds = array<i64: 1>, scalar_prefetch = 0 : i64, scratch_operands = 0 : i64, tpu.core_type = #tpu.core_type<tc>, window_params = [{transform_indices = @transform_0, window_bounds = array<i64: 8, 32>}, {pipeline_mode = #tpu.pipeline_mode<synchronous>, transform_indices = @transform_1, window_bounds = array<i64: 16, 32>}, {pipeline_mode = #tpu.pipeline_mode<synchronous>, transform_indices = @transform_2, window_bounds = array<i64: 16, 1>}, {transform_indices = @transform_3, window_bounds = array<i64: 1, 8>}]} {
    %c0 = arith.constant 0 : index
    %c0_0 = arith.constant 0 : index
    %0 = vector.load %arg1[%c0, %c0_0] : memref<8x32xf32, #tpu.memory_space<vmem>>, vector<8x32xf32>
    %c0_1 = arith.constant 0 : index
    %c0_2 = arith.constant 0 : index
    %1 = vector.load %arg2[%c0_1, %c0_2] : memref<16x32xf32, #tpu.memory_space<vmem>>, vector<16x32xf32>
    %cst = arith.constant dense<0.000000e+00> : vector<16x8xf32>
    %2 = tpu.matmul %1, %0, %cst {dimension_numbers = #tpu.dot_dimension_numbers<[1], [1], [0], [0], [0, 0, 1, 0], [], []>} : vector<16x32xf32>, vector<8x32xf32>, vector<16x8xf32> -> vector<16x8xf32>
    %cst_3 = arith.constant dense<0xFF800000> : vector<8xf32>
    %3 = vector.multi_reduction <maximumf>, %2, %cst_3 [0] : vector<16x8xf32> to vector<8xf32>
    %4 = vector.shape_cast %3 : vector<8xf32> to vector<1x8xf32>
    %5 = vector.broadcast %4 : vector<1x8xf32> to vector<16x8xf32>
    %6 = arith.subf %2, %5 : vector<16x8xf32>
    %7 = math.exp %6 : vector<16x8xf32>
    %cst_4 = arith.constant dense<0.000000e+00> : vector<8xf32>
    %8 = vector.multi_reduction <add>, %7, %cst_4 [0] : vector<16x8xf32> to vector<8xf32>
    %9 = vector.shape_cast %8 : vector<8xf32> to vector<1x8xf32>
    %c0_5 = arith.constant 0 : index
    %c0_6 = arith.constant 0 : index
    %10 = vector.load %arg3[%c0_5, %c0_6] : memref<16x1xf32, #tpu.memory_space<vmem>>, vector<16x1xf32>
    %11 = vector.broadcast %10 : vector<16x1xf32> to vector<16x8xf32>
    %12 = arith.mulf %7, %11 : vector<16x8xf32>
    %cst_7 = arith.constant dense<0.000000e+00> : vector<8xf32>
    %13 = vector.multi_reduction <add>, %12, %cst_7 [0] : vector<16x8xf32> to vector<8xf32>
    %14 = vector.shape_cast %13 : vector<8xf32> to vector<1x8xf32>
    %15 = tpu.reciprocal %9 : vector<1x8xf32> -> vector<1x8xf32>
    %16 = arith.mulf %14, %15 : vector<1x8xf32>
    %c0_8 = arith.constant 0 : index
    %c0_9 = arith.constant 0 : index
    %17 = vector.load %arg4[%c0_8, %c0_9] : memref<1x8xf32, #tpu.memory_space<vmem>>, vector<1x8xf32>
    tpu.vector_store %arg4[%c0_8, %c0_9], %16 {strides = array<i32>} : memref<1x8xf32, #tpu.memory_space<vmem>>, vector<1x8xf32>,
    return
  }
  func.func @transform_0(%arg0: i32) -> (i32, i32) {
    %c0_i32 = arith.constant 0 : i32
    %c0_i32_0 = arith.constant 0 : i32
    return %arg0, %c0_i32 : i32, i32
  }
  func.func @transform_1(%arg0: i32) -> (i32, i32) {
    %c0_i32 = arith.constant 0 : i32
    %c0_i32_0 = arith.constant 0 : i32
    %c0_i32_1 = arith.constant 0 : i32
    return %c0_i32, %c0_i32_0 : i32, i32
  }
  func.func @transform_2(%arg0: i32) -> (i32, i32) {
    %c0_i32 = arith.constant 0 : i32
    %c0_i32_0 = arith.constant 0 : i32
    %c0_i32_1 = arith.constant 0 : i32
    return %c0_i32, %c0_i32_0 : i32, i32
  }
  func.func @transform_3(%arg0: i32) -> (i32, i32) {
    %c0_i32 = arith.constant 0 : i32
    %c0_i32_0 = arith.constant 0 : i32
    return %c0_i32, %arg0 : i32, i32
  }
}

</mosaic_0001>

<bundles_post_ra>
// kernel: tpu_custom_call.1
= control target key start
LH: loop header
LB: loop body
LE: loop exit
PB: predicated region body
PF: predicated region fallthrough
CT: control target
= control target key end

     0   :  { %8 = vsyncpa [#allocation3], 0  ;;  %s316_s0 = inlined_call_operand.hbm [shape: f32[8,32], index: 0, kind: input, shape index: {}]   ;;  %s317_s1 = inlined_call_operand.vmem [shape: f32[16,32], index: 1, kind: input, shape index: {}]   ;;  %s318_s2 = inlined_call_operand.vmem [shape: f32[16,1], index: 2, kind: input, shape index: {}]   ;;  %s319_s3 = inlined_call_operand.hbm [shape: f32[1,8], index: 3, kind: output, shape index: {}]  }
   0x1   :  { %9 = vsyncpa [#allocation4], 0  ;;  %s251_s12 = smov [#allocation2]   ;;  %s203_s16 = scalar_lea.hbm %s316_s0, 128 }
   0x2   :  { %s16_s13 = sshll.u32 %s251_s12, 4  ;;  %p204_p0 = scmp.ne.s32.totalorder %s316_s0, %s203_s16  ;;  %s17_s13 = int_to_ptr.vmem [resolvable:$true] %s16_s13 }
   0x3   :  { %p207_p1 = scmp.lt.u32.totalorder %s203_s16, %s316_s0 }
   0x5   :  { %p209_p2 = pnand %p207_p1, %p204_p0 }
   0x7   :  { %212 = shalt.err (!%p209_p2)
}
   0x8   :  { %s213_s21 = scalar_lea.vmem %s17_s13, 128  ;;  %p218_p4 = scmp.lt.s32.totalorder %s17_s13, %s17_s13 }
   0x9   :  { %p214_p3 = scmp.ne.s32.totalorder %s17_s13, %s213_s21  ;;  %p219_p5 = scmp.lt.s32.totalorder %s213_s21, %s213_s21 }
   0xb   :  { %p220_p6 = por %p219_p5, %p218_p4 }
   0xd   :  { %p221_p7 = pnand %p220_p6, %p214_p3 }
   0xf   :  { %224 = shalt.err (!%p221_p7)
}
  0x10   :  { %19 = dma.hbm_to_vmem [thread:$0]  %s316_s0, 128, %s17_s13, [#allocation3]  }
  0x11   :  { %247 = dma.done.wait [#allocation3], 128  }
  0x12   :  { %248 = vsyncadd [#allocation3], 4294967168  ;;  %v252_v0 = vmov 0   ;;  %vm30_vm0 = vcmask 261120   ;;  %v27_v1 = vld [vmem:[#allocation2] sm:$0xff]  ;;  %v29_v4 = vld [vmem:[%s317_s1 + $0x8] sm:$0xff] }
  0x13   :  { %196 = vset.pattern.permute.xlu0 %v252_v0  ;;  %v28_v2 = vld [vmem:[%s317_s1] sm:$0xff]  ;;  %188 = vmatprep.subr.msk.mxu0 %vm30_vm0, %v27_v1  ;;  %v141_v5 = vld [vmem:[%s318_s2 + $0x8] sm:$0xff]  ;;  %vm115_vm1 = vcmask 64512   ;;  %s253_s1 = smov [#allocation5]   ;;  %vm165_vm2 = vcmask 57344  }
  0x14   :  { %190 = vmatprep.mubr.msk.f32.mxu0 %vm30_vm0, %v28_v2  ;;  %v140_v3 = vld [vmem:[%s318_s2] sm:$0xff]  ;;  %189 = vmatpush3.xpose.msk.msra.mxu0 %vm30_vm0, %v27_v1  ;;  %s173_s2 = sshll.u32 %s253_s1, 4  ;;  %s174_s2 = int_to_ptr.vmem [resolvable:$true] %s173_s2 }
  0x15   :  { %144 = vperm.xlu0 %196, %v140_v3   ;;  %s225_s4 = scalar_lea.vmem %s174_s2, 16  ;;  %s229_s5 = scalar_lea.vmem %s174_s2, 32 }
  0x16   :  { %p226_p8 = scmp.ne.s32.totalorder %s174_s2, %s225_s4  ;;  %p230_p9 = scmp.lt.s32.totalorder %s174_s2, %s174_s2 }
  0x17   :  { %191 = vmatmul.mubr.msk.f32.vlgmr.msra.gmra.mrb[0].mxu0 %vm30_vm0, %v29_v4  ;;  %p231_p10 = scmp.lt.s32.totalorder %s229_s5, %s225_s4 }
  0x19   :  { %149 = vperm.xlu0 %196, %v141_v5   ;;  %p232_p11 = por %p231_p10, %p230_p9 }
  0x1b   :  { %p233_p12 = pnand %p232_p11, %p226_p8 }
  0x94   :  { %v145_v21 = vpop.permute.xlu0 %144 }
  0x98   :  { %v150_v22 = vpop.permute.xlu0 %149 }
  0xea   :  { %v192_v6 = vpop.f32.mrb[0].mxu0 }
  0xeb   :  { %v117_v7 = vsel %vm115_vm1, %v192_v6, -inf  ;;  %v106_v8 = vpop.f32.mrb[1].mxu0 }
  0xec   :  { %v116_v9 = vsel %vm115_vm1, %v106_v8, -inf }
  0xed   :  { %v118_v10 = vmax.f32 %v116_v9, %v117_v7 }
  0xef   :  { %v119_v11 = vrot.slane %v118_v10, 4 }
  0xf1   :  { %v120_v12 = vmax.f32 %v118_v10, %v119_v11 }
  0xf3   :  { %v121_v13 = vrot.slane %v120_v12, 2 }
  0xf5   :  { %v122_v14 = vmax.f32 %v120_v12, %v121_v13 }
  0xf7   :  { %v123_v15 = vrot.slane %v122_v14, 1 }
  0xf9   :  { %v124_v16 = vmax.f32 %v122_v14, %v123_v15 }
  0xfb   :  { %v125_v17 = vsub.f32 %v106_v8, %v124_v16  ;;  %v126_v18 = vsub.f32 %v192_v6, %v124_v16 }
  0xfd   :  { %v127_v19 = vmul.f32 1.442695, %v125_v17  ;;  %v129_v20 = vmul.f32 1.442695, %v126_v18 }
  0xff   :  { %197 = vpow2.f32 %v127_v19 }
 0x100   :  { %199 = vpow2.f32 %v129_v20 }
 0x109   :  { %v198_v23 = vpop.eup %197 }
 0x10a   :  { %v200_v24 = vpop.eup %199  ;;  %v131_v25 = vsel %vm115_vm1, %v198_v23, 0.0  ;;  %v152_v26 = vmul.f32 %v198_v23, %v145_v21 }
 0x10b   :  { %v132_v27 = vsel %vm115_vm1, %v200_v24, 0.0  ;;  %v153_v28 = vmul.f32 %v200_v24, %v150_v22 }
 0x10c   :  { %v133_v29 = vadd.f32 %v132_v27, %v131_v25  ;;  %v154_v30 = vsel %vm115_vm1, %v152_v26, 0.0 }
 0x10d   :  { %v155_v31 = vsel %vm115_vm1, %v153_v28, 0.0 }
 0x10e   :  { %v134_v32 = vrot.slane %v133_v29, 4  ;;  %v156_v33 = vadd.f32 %v155_v31, %v154_v30 }
 0x110   :  { %v135_v34 = vadd.f32 %v134_v32, %v133_v29  ;;  %v157_v35 = vrot.slane %v156_v33, 4 }
 0x112   :  { %v136_v36 = vrot.slane %v135_v34, 2  ;;  %v158_v37 = vadd.f32 %v157_v35, %v156_v33 }
 0x114   :  { %v137_v38 = vadd.f32 %v136_v36, %v135_v34  ;;  %v159_v40 = vrot.slane %v158_v37, 2 }
 0x116   :  { %v138_v39 = vrot.slane %v137_v38, 1  ;;  %v160_v42 = vadd.f32 %v159_v40, %v158_v37 }
 0x118   :  { %v139_v41 = vadd.f32 %v138_v39, %v137_v38  ;;  %v161_v43 = vrot.slane %v160_v42, 1 }
 0x11a   :  { %201 = vrcp.f32 %v139_v41  ;;  %v162_v44 = vadd.f32 %v161_v43, %v160_v42 }
 0x124   :  { %v202_v45 = vpop.eup %201 }
 0x125   :  { %v164_v46 = vmul.f32 %v202_v45, %v162_v44 }
 0x127   :  { %166 = vst.msk [vmem:[#allocation5] sm:$0x1] %vm165_vm2, %v164_v46 }
 0x128   :  { %236 = shalt.err (!%p233_p12)
}
 0x129   :  { %s237_s8 = scalar_lea.hbm %s319_s3, 16 }
 0x12a   :  { %p238_p13 = scmp.ne.s32.totalorder %s319_s3, %s237_s8  ;;  %p241_p0 = scmp.lt.u32.totalorder %s237_s8, %s319_s3 }
 0x12c   :  { %p243_p1 = pnand %p241_p0, %p238_p13 }
 0x12e   :  { %246 = shalt.err (!%p243_p1)
}
 0x12f   :  { %176 = dma.vmem_to_hbm [thread:$0]  %s174_s2, 16, %s319_s3, [#allocation4]  }
 0x130   :  { %249 = dma.done.wait [#allocation4], 16  }
 0x131   :  { %250 = vsyncadd [#allocation4], 4294967280 }
 0x132   :  { %180 = vsyncpa [#allocation3], 1 }
 0x133   :  { %181 = vsyncpa [#allocation4], 1 }

</bundles_post_ra>
